<compile_context>
chip_gen: v6e
topology: v6e:2x2x1
jax: 0.10.0
libtpu: 0.0.40
codegen_flags: <defaults>
</compile_context>

<pallas_src>
import functools
import math

import jax
import jax.numpy as jnp
from jax.experimental import pallas as pl
from jax.experimental.pallas import tpu as pltpu

LANES = 128                       # lane width: last dim of every tile
CHUNK_R = 256                     # rows per in-kernel sub-chunk (~128 KiB f32 temps)
VMEM_LIMIT = 32 * 1024 * 1024
BLOCK_BUDGET = 20 * 1024 * 1024   # budget for double-buffered block buffers


def _round_up(a, m):
    return (a + m - 1) // m * m


@functools.lru_cache(maxsize=None)
def _gen_row_cap():
    """Per-generation row cap: bigger blocks on v7x to amortize grid-step overhead."""
    cap = 4096
    try:
        info = pltpu.get_tpu_info()
        name = "".join(str(getattr(info, a, "")) for a in
                       ("chip_version", "version", "chip", "name"))
        if "7" in name:
            cap = 8192
    except Exception:
        pass
    return cap


def _default_tile_cap(in_itemsize, reduce):
    # 2 inputs (and 1 output if reduce=False), double-buffered.
    per_row = LANES * (4 * in_itemsize + (0 if reduce else 2 * in_itemsize))
    cap = min(_gen_row_cap(), BLOCK_BUDGET // per_row)
    return max(CHUNK_R, (cap // CHUNK_R) * CHUNK_R)


def _pow_gamma(m, gamma):
    """(1-pt)**gamma; small integer gamma -> explicit multiplies (no EUP pow)."""
    g = float(gamma)
    if g == int(g) and 0 <= int(g) <= 8:
        gi = int(g)
        if gi == 0:
            return jnp.ones_like(m)
        out = m
        for _ in range(gi - 1):
            out = out * m
        return out
    return m ** g


def _focal_elem(x, t, alpha, gamma, logits, binary_targets, in_kernel):
    """Elementwise focal loss in f32 (matches the PyTorch module).

    binary_targets=True assumes t in {0,1} and replaces exp(-bce) with a
    sigmoid built on an approximate reciprocal (one fewer EUP transcendental).
    """
    if logits:
        # F.binary_cross_entropy_with_logits, numerically stable form.
        e = jnp.exp(-jnp.abs(x))
        bce = jnp.maximum(x, 0.0) - x * t + jnp.log1p(e)
        if binary_targets:
            one_plus_e = 1.0 + e
            inv = (pl.reciprocal(one_plus_e, approx=True) if in_kernel
                   else 1.0 / one_plus_e)
            sig = jnp.where(x >= 0.0, inv, e * inv)       # sigmoid(x)
            pt = jnp.where(t >= 0.5, sig, 1.0 - sig)      # p^t (1-p)^(1-t), t in {0,1}
        else:
            pt = jnp.exp(-bce)
    else:
        # F.binary_cross_entropy clamps log terms at -100.
        logx = jnp.maximum(jnp.log(x), -100.0)
        log1mx = jnp.maximum(jnp.log1p(-x), -100.0)
        bce = -(t * logx + (1.0 - t) * log1mx)
        if binary_targets:
            pt = jnp.where(t >= 0.5, x, 1.0 - x)
        else:
            pt = jnp.exp(-bce)
    return alpha * _pow_gamma(1.0 - pt, gamma) * bce


def _focal_partial_kernel(x_ref, t_ref, o_ref, *, alpha, gamma, logits,
                          binary_targets, chunk_r, nfull, rem_r, valid_last,
                          unroll):
    """Per-block (8,128) partial sums, streamed in chunk_r-row sub-chunks."""

    def chunk_partial(r0, rcount, masked):
        xs = x_ref[pl.ds(r0, rcount), :].astype(jnp.float32)
        ts = t_ref[pl.ds(r0, rcount), :].astype(jnp.float32)
        fl = _focal_elem(xs, ts, alpha, gamma, logits, binary_targets, True)
        if masked:
            # Block-local indices only: never overflows int32.
            row = jax.lax.broadcasted_iota(jnp.int32, fl.shape, 0) + r0
            col = jax.lax.broadcasted_iota(jnp.int32, fl.shape, 1)
            fl = jnp.where(row * LANES + col < valid_last, fl, 0.0)
        # (rcount,128) -> (8,128): pure VPU adds, no cross-lane XLU reduce.
        return fl.reshape(rcount // 8, 8, LANES).sum(axis=0)

    def block_partial(masked):
        def body(c, acc):
            r0 = pl.multiple_of(c * chunk_r, chunk_r)
            return acc + chunk_partial(r0, chunk_r, masked)

        acc = jax.lax.fori_loop(0, nfull, body,
                                jnp.zeros((8, LANES), jnp.float32),
                                unroll=unroll)
        if rem_r:
            acc = acc + chunk_partial(nfull * chunk_r, rem_r, masked)
        return acc

    if valid_last is None:
        o_ref[...] = block_partial(False)
    else:
        i = pl.program_id(0)
        last = pl.num_programs(0) - 1

        @pl.when(i != last)
        def _():
            o_ref[...] = block_partial(False)

        @pl.when(i == last)
        def _():
            o_ref[...] = block_partial(True)


def _focal_map_kernel(x_ref, t_ref, o_ref, *, alpha, gamma, logits,
                      binary_targets, chunk_r, nfull, rem_r, unroll):
    """Elementwise focal map (reduce=False), streamed in chunk_r-row sub-chunks."""

    def do_chunk(r0, rcount):
        xs = x_ref[pl.ds(r0, rcount), :].astype(jnp.float32)
        ts = t_ref[pl.ds(r0, rcount), :].astype(jnp.float32)
        fl = _focal_elem(xs, ts, alpha, gamma, logits, binary_targets, True)
        o_ref[pl.ds(r0, rcount), :] = fl.astype(o_ref.dtype)

    def body(c, carry):
        do_chunk(pl.multiple_of(c * chunk_r, chunk_r), chunk_r)
        return carry

    jax.lax.fori_loop(0, nfull, body, 0, unroll=unroll)
    if rem_r:
        do_chunk(nfull * chunk_r, rem_r)


def focal_loss(inputs, targets, alpha=1.0, gamma=2.0, logits=True, reduce=True,
               assume_binary_targets=False, tile_r_cap=None):
    """Pallas implementation of FocalLoss.forward."""
    orig_shape = inputs.shape
    orig_dtype = inputs.dtype
    n = int(math.prod(orig_shape))
    if n == 0:
        if reduce:                       # torch.mean of empty -> nan
            return jnp.asarray(float("nan"), jnp.float32)
        return jnp.zeros(orig_shape, orig_dtype)

    x = inputs.reshape(-1)
    t = targets.reshape(-1)

    itemsize = jnp.dtype(orig_dtype).itemsize
    # Sublane packing granule: 8 rows (32-bit), 16 (16-bit), 32 (8-bit).
    granule = 8 * max(1, 4 // max(1, itemsize))
    cap = tile_r_cap if tile_r_cap is not None else _default_tile_cap(itemsize, reduce)
    cap = max(CHUNK_R, _round_up(int(cap), CHUNK_R))

    rows0 = pl.cdiv(n, LANES)
    need_pad = (n % LANES != 0) or (n < 8 * LANES)
    if need_pad:
        # Fallback (lane-unaligned or tiny input): pad to whole blocks so no
        # block is ragged.  Only this case pays an extra HBM copy.
        tile_r = min(cap, _round_up(rows0, granule))
        rows = _round_up(rows0, tile_r)
        pad = rows * LANES - n
        x = jnp.pad(x, (0, pad))
        t = jnp.pad(t, (0, pad))
    else:
        # Zero-copy path: no pad, no slice.  The last grid block may be ragged;
        # OOB reads are masked in-kernel, OOB writes are discarded.
        tile_r = min(cap, (rows0 // granule) * granule)
        if tile_r < 8:
            tile_r = (rows0 // 8) * 8
        rows = rows0

    x2 = x.reshape(rows, LANES)
    t2 = t.reshape(rows, LANES)

    num_blocks = pl.cdiv(rows, tile_r)
    block_elems = tile_r * LANES
    valid_last = None
    if num_blocks * block_elems != n:     # last block has pad zeros or OOB garbage
        valid_last = n - (num_blocks - 1) * block_elems

    chunk_r = min(CHUNK_R, tile_r)
    nfull = tile_r // chunk_r
    rem_r = tile_r - nfull * chunk_r
    unroll = True if nfull <= 8 else 4

    compiler_params = pltpu.CompilerParams(
        dimension_semantics=("parallel",),
        vmem_limit_bytes=VMEM_LIMIT,
    )
    in_specs = [pl.BlockSpec((tile_r, LANES), lambda i: (i, 0)),
                pl.BlockSpec((tile_r, LANES), lambda i: (i, 0))]

    if reduce:
        kernel = functools.partial(
            _focal_partial_kernel, alpha=float(alpha), gamma=float(gamma),
            logits=bool(logits), binary_targets=bool(assume_binary_targets),
            chunk_r=chunk_r, nfull=nfull, rem_r=rem_r, valid_last=valid_last,
            unroll=unroll)
        partials = pl.pallas_call(
            kernel,
            out_shape=jax.ShapeDtypeStruct((num_blocks * 8, LANES), jnp.float32),
            grid_spec=pltpu.PrefetchScalarGridSpec(
                num_scalar_prefetch=0,
                grid=(num_blocks,),
                in_specs=in_specs,
                out_specs=pl.BlockSpec((8, LANES), lambda i: (i, 0)),
            ),
            compiler_params=compiler_params,
        )(x2, t2)
        # Tiny final reduction (num_blocks*8*128 f32) in the wrapper.
        return jnp.sum(partials) / jnp.float32(n)

    kernel = functools.partial(
        _focal_map_kernel, alpha=float(alpha), gamma=float(gamma),
        logits=bool(logits), binary_targets=bool(assume_binary_targets),
        chunk_r=chunk_r, nfull=nfull, rem_r=rem_r, unroll=unroll)
    out2 = pl.pallas_call(
        kernel,
        out_shape=jax.ShapeDtypeStruct((rows, LANES), orig_dtype),
        grid_spec=pltpu.PrefetchScalarGridSpec(
            num_scalar_prefetch=0,
            grid=(num_blocks,),
            in_specs=in_specs,
            out_specs=pl.BlockSpec((tile_r, LANES), lambda i: (i, 0)),
        ),
        compiler_params=compiler_params,
    )(x2, t2)
    if need_pad:
        return out2.reshape(-1)[:n].reshape(orig_shape)
    return out2.reshape(orig_shape)


def _focal_loss_ref(inputs, targets, alpha=1.0, gamma=2.0, logits=True,
                    reduce=True):
    """Plain-JAX reference mirroring the PyTorch module (exact f32 math)."""
    x = inputs.astype(jnp.float32)
    t = targets.astype(jnp.float32)
    fl = _focal_elem(x, t, float(alpha), float(gamma), bool(logits), False, False)
    return jnp.mean(fl) if reduce else fl


if __name__ == "__main__":
    key = jax.random.PRNGKey(0)
    k1, k2, k3, k4 = jax.random.split(key, 4)

    # --- default config: logits, reduce=True, NCHW [2, 4, 16, 16] f32 (zero-copy path) ---
    inputs = jax.random.normal(k1, (2, 4, 16, 16), dtype=jnp.float32) * 2.0
    targets = jax.random.bernoulli(k2, 0.3, (2, 4, 16, 16)).astype(jnp.float32)

    loss = jax.block_until_ready(focal_loss(inputs, targets))
    ref = _focal_loss_ref(inputs, targets)
    assert jnp.allclose(loss, ref, rtol=1e-5, atol=1e-6), (loss, ref)

    # --- reduce=False (elementwise map), output dtype == input dtype ---
    fl_map = jax.block_until_ready(focal_loss(inputs, targets, reduce=False))
    ref_map = _focal_loss_ref(inputs, targets, reduce=False)
    assert fl_map.shape == inputs.shape and fl_map.dtype == inputs.dtype
    assert jnp.allclose(fl_map, ref_map, rtol=1e-5, atol=1e-6)

    # --- hard-label fast path (one fewer transcendental), looser tolerance ---
    loss_fast = jax.block_until_ready(
        focal_loss(inputs, targets, assume_binary_targets=True))
    assert jnp.allclose(loss_fast, ref, rtol=2e-2, atol=1e-3), (loss_fast, ref)

    # --- lane-aligned but ragged last block (zero-copy + in-kernel mask) ---
    xr = jax.random.normal(k3, (2, 5, 8, 16), dtype=jnp.float32)      # 1280 = 10 rows
    tr = jax.random.bernoulli(k4, 0.5, (2, 5, 8, 16)).astype(jnp.float32)
    assert jnp.allclose(jax.block_until_ready(focal_loss(xr, tr)),
                        _focal_loss_ref(xr, tr), rtol=1e-5, atol=1e-6)
    assert jnp.allclose(jax.block_until_ready(focal_loss(xr, tr, reduce=False)),
                        _focal_loss_ref(xr, tr, reduce=False), rtol=1e-5, atol=1e-6)

    # --- multi-block + ragged last block (explicit small tile cap) and rem-chunk path ---
    xm = jax.random.normal(k1, (2, 135, 128), dtype=jnp.float32)      # 270 rows of 128
    tm = jax.random.bernoulli(k2, 0.4, (2, 135, 128)).astype(jnp.float32)
    ref_m = _focal_loss_ref(xm, tm)
    assert jnp.allclose(jax.block_until_ready(focal_loss(xm, tm)), ref_m,
                        rtol=1e-5, atol=1e-6)
    assert jnp.allclose(jax.block_until_ready(focal_loss(xm, tm, tile_r_cap=256)),
                        ref_m, rtol=1e-5, atol=1e-6)
    assert jnp.allclose(
        jax.block_until_ready(focal_loss(xm, tm, reduce=False, tile_r_cap=256)),
        _focal_loss_ref(xm, tm, reduce=False), rtol=1e-5, atol=1e-6)

    # --- odd size (exercises the padded / masked fallback path) ---
    xi = jax.random.normal(k3, (3, 5, 7, 11), dtype=jnp.float32)
    ti = jax.random.bernoulli(k4, 0.5, (3, 5, 7, 11)).astype(jnp.float32)
    loss_odd = jax.block_until_ready(focal_loss(xi, ti))
    ref_odd = _focal_loss_ref(xi, ti)
    assert jnp.allclose(loss_odd, ref_odd, rtol=1e-5, atol=1e-6), (loss_odd, ref_odd)

    # --- logits=False path (probability inputs) ---
    probs = jax.nn.sigmoid(xi)
    loss_p = jax.block_until_ready(focal_loss(probs, ti, logits=False))
    ref_p = _focal_loss_ref(probs, ti, logits=False)
    assert jnp.allclose(loss_p, ref_p, rtol=1e-5, atol=1e-6), (loss_p, ref_p)

    # --- bf16 inputs stay bf16 on the HBM side (kernel upcasts internally) ---
    xb = inputs.astype(jnp.bfloat16)
    tb = targets.astype(jnp.bfloat16)
    loss_b = jax.block_until_ready(focal_loss(xb, tb))
    ref_b = _focal_loss_ref(xb, tb)
    assert jnp.allclose(loss_b, ref_b, rtol=1e-4, atol=1e-5), (loss_b, ref_b)

    # --- empty input guard (no kernel launch) ---
    e_in = jnp.zeros((0, 4), jnp.float32)
    e_tg = jnp.zeros((0, 4), jnp.float32)
    assert bool(jnp.isnan(focal_loss(e_in, e_tg)))
    assert focal_loss(e_in, e_tg, reduce=False).shape == (0, 4)

    print("KERNEL_OK")
</pallas_src>

<mosaic_0001>
module attributes {stable_mosaic.version = 11 : i64} {
  func.func @_focal_partial_kernel(%arg0: i32, %arg1: memref<16x128xf32, #tpu.memory_space<vmem>>, %arg2: memref<16x128xf32, #tpu.memory_space<vmem>>, %arg3: memref<8x128xf32, #tpu.memory_space<vmem>>) attributes {dimension_semantics = [#tpu.dimension_semantics<parallel>], iteration_bounds = array<i64: 1>, scalar_prefetch = 0 : i64, scratch_operands = 0 : i64, tpu.core_type = #tpu.core_type<tc>, window_params = [{transform_indices = @transform_0, window_bounds = array<i64: 16, 128>}, {transform_indices = @transform_1, window_bounds = array<i64: 16, 128>}, {transform_indices = @transform_2, window_bounds = array<i64: 8, 128>}]} {
    %cst = arith.constant 0.000000e+00 : f32
    %0 = vector.broadcast %cst : f32 to vector<8x128xf32>
    %c0_i32 = arith.constant 0 : i32
    %c16_i32 = arith.constant 16 : i32
    %1 = arith.muli %c0_i32, %c16_i32 : i32
    %2 = tpu.assume_multiple %1, 16 : i32
    %3 = arith.index_cast %2 : i32 to index
    %c0 = arith.constant 0 : index
    %4 = vector.load %arg1[%3, %c0] : memref<16x128xf32, #tpu.memory_space<vmem>>, vector<16x128xf32>
    %5 = arith.index_cast %2 : i32 to index
    %c0_0 = arith.constant 0 : index
    %6 = vector.load %arg2[%5, %c0_0] : memref<16x128xf32, #tpu.memory_space<vmem>>, vector<16x128xf32>
    %7 = math.absf %4 : vector<16x128xf32>
    %cst_1 = arith.constant 0.000000e+00 : f32
    %8 = vector.broadcast %cst_1 : f32 to vector<16x128xf32>
    %9 = arith.subf %8, %7 : vector<16x128xf32>
    %10 = math.exp %9 : vector<16x128xf32>
    %cst_2 = arith.constant 0.000000e+00 : f32
    %11 = vector.broadcast %cst_2 : f32 to vector<16x128xf32>
    %12 = arith.maximumf %4, %11 : vector<16x128xf32>
    %13 = arith.mulf %4, %6 : vector<16x128xf32>
    %14 = arith.subf %12, %13 : vector<16x128xf32>
    %15 = math.log1p %10 : vector<16x128xf32>
    %16 = arith.addf %14, %15 : vector<16x128xf32>
    %cst_3 = arith.constant 0.000000e+00 : f32
    %17 = vector.broadcast %cst_3 : f32 to vector<16x128xf32>
    %18 = arith.subf %17, %16 : vector<16x128xf32>
    %19 = math.exp %18 : vector<16x128xf32>
    %cst_4 = arith.constant 1.000000e+00 : f32
    %20 = vector.broadcast %cst_4 : f32 to vector<16x128xf32>
    %21 = arith.subf %20, %19 : vector<16x128xf32>
    %22 = arith.mulf %21, %21 : vector<16x128xf32>
    %cst_5 = arith.constant 1.000000e+00 : f32
    %23 = vector.broadcast %cst_5 : f32 to vector<16x128xf32>
    %24 = arith.mulf %23, %22 : vector<16x128xf32>
    %25 = arith.mulf %24, %16 : vector<16x128xf32>
    %26 = vector.shape_cast %25 : vector<16x128xf32> to vector<2x8x128xf32>
    %cst_6 = arith.constant dense<0.000000e+00> : vector<8x128xf32>
    %27 = vector.multi_reduction <add>, %26, %cst_6 [0] : vector<2x8x128xf32> to vector<8x128xf32>
    %28 = arith.addf %0, %27 : vector<8x128xf32>
    %c1_i32 = arith.constant 1 : i32
    %c0_7 = arith.constant 0 : index
    %c0_8 = arith.constant 0 : index
    %29 = vector.load %arg3[%c0_7, %c0_8] : memref<8x128xf32, #tpu.memory_space<vmem>>, vector<8x128xf32>
    tpu.vector_store %arg3[%c0_7, %c0_8], %28 {strides = array<i32>} : memref<8x128xf32, #tpu.memory_space<vmem>>, vector<8x128xf32>,
    return
  }
  func.func @transform_0(%arg0: i32) -> (i32, i32) {
    %c0_i32 = arith.constant 0 : i32
    %c0_i32_0 = arith.constant 0 : i32
    return %arg0, %c0_i32 : i32, i32
  }
  func.func @transform_1(%arg0: i32) -> (i32, i32) {
    %c0_i32 = arith.constant 0 : i32
    %c0_i32_0 = arith.constant 0 : i32
    return %arg0, %c0_i32 : i32, i32
  }
  func.func @transform_2(%arg0: i32) -> (i32, i32) {
    %c0_i32 = arith.constant 0 : i32
    %c0_i32_0 = arith.constant 0 : i32
    return %arg0, %c0_i32 : i32, i32
  }
}

</mosaic_0001>

<bundles_post_ra>
// kernel: tpu_custom_call.1
= control target key start
LH: loop header
LB: loop body
LE: loop exit
PB: predicated region body
PF: predicated region fallthrough
CT: control target
= control target key end

     0   :  { %7 = vsyncpa [#allocation3], 0  ;;  %s221_s0 = inlined_call_operand.hbm [shape: f32[16,128], index: 0, kind: input, shape index: {}]   ;;  %s222_s1 = inlined_call_operand.hbm [shape: f32[16,128], index: 1, kind: input, shape index: {}]   ;;  %s223_s2 = inlined_call_operand.hbm [shape: f32[8,128], index: 2, kind: output, shape index: {}]  }
   0x1   :  { %8 = vsyncpa [#allocation6], 0 }
   0x2   :  { %9 = vsyncpa [#allocation4], 0  ;;  %s192_s9 = smov [#allocation2]  }
   0x3   :  { %s15_s10 = sshll.u32 %s192_s9, 4  ;;  %s16_s10 = int_to_ptr.vmem [resolvable:$true] %s15_s10 }
   0x4   :  { %s134_s11 = scalar_lea.vmem %s16_s10, 256  ;;  %p139_p1 = scmp.lt.s32.totalorder %s16_s10, %s16_s10 }
   0x5   :  { %p135_p0 = scmp.ne.s32.totalorder %s16_s10, %s134_s11  ;;  %p140_p2 = scmp.lt.s32.totalorder %s134_s11, %s134_s11 }
   0x7   :  { %p141_p3 = por %p140_p2, %p139_p1 }
   0x9   :  { %p142_p4 = pnand %p141_p3, %p135_p0 }
   0xb   :  { %145 = shalt.err (!%p142_p4)
}
   0xc   :  { %s193_s12 = smov 128   ;;  %s194_s13 = smov 8  }
   0xd   :  { %21 = dma.hbm_to_vmem [thread:$0]  %s221_s0, 256, %s16_s10, [#allocation3], %s193_s12, %s193_s12, %s194_s13  }
   0xe   :  { %s195_s16 = smov [#allocation5]  }
   0xf   :  { %s27_s17 = sshll.u32 %s195_s16, 4  ;;  %s28_s17 = int_to_ptr.vmem [resolvable:$true] %s27_s17 }
  0x10   :  { %s154_s18 = scalar_lea.vmem %s28_s17, 256  ;;  %p159_p6 = scmp.lt.s32.totalorder %s28_s17, %s28_s17 }
  0x11   :  { %p155_p5 = scmp.ne.s32.totalorder %s28_s17, %s154_s18  ;;  %p160_p7 = scmp.lt.s32.totalorder %s154_s18, %s154_s18 }
  0x13   :  { %p161_p8 = por %p160_p7, %p159_p6 }
  0x15   :  { %p162_p9 = pnand %p161_p8, %p155_p5 }
  0x17   :  { %165 = shalt.err (!%p162_p9)
}
  0x18   :  { %33 = dma.hbm_to_vmem [thread:$0]  %s222_s1, 256, %s28_s17, [#allocation6], %s193_s12, %s193_s12, %s194_s13  }
  0x19   :  { %186 = dma.done.wait [#allocation3], 256  }
  0x1a   :  { %187 = vsyncadd [#allocation3], 4294967040 }
  0x1b   :  { %188 = dma.done.wait [#allocation6], 256  }
  0x1c   :  { %189 = vsyncadd [#allocation6], 4294967040  ;;  %v40_v0 = vld [vmem:[#allocation2] sm:$0xff]  ;;  %v41_v1 = vld [vmem:[#allocation2 + $0x8] sm:$0xff]  ;;  %s196_s0 = smov [#allocation7]  }
  0x1d   :  { %v44_v2 = vand.u32 2147483647, %v40_v0  ;;  %v45_v3 = vand.u32 2147483647, %v41_v1  ;;  %v42_v14 = vld [vmem:[#allocation5] sm:$0xff]  ;;  %v43_v15 = vld [vmem:[#allocation5 + $0x8] sm:$0xff] }
  0x1e   :  { %v52_v17 = vmax.f32 %v40_v0, 0.0  ;;  %v54_v18 = vmul.f32 %v42_v14, %v40_v0  ;;  %v53_v21 = vmax.f32 %v41_v1, 0.0  ;;  %v55_v22 = vmul.f32 %v43_v15, %v41_v1  ;;  %s99_s1 = sshll.u32 %s196_s0, 4  ;;  %s100_s1 = int_to_ptr.vmem [resolvable:$true] %s99_s1 }
  0x1f   :  { %v46_v4 = vsub.f32 0.0, %v44_v2  ;;  %v47_v5 = vsub.f32 0.0, %v45_v3  ;;  %s166_s21 = scalar_lea.vmem %s100_s1, 128  ;;  %p171_p11 = scmp.lt.s32.totalorder %s100_s1, %s100_s1 }
  0x20   :  { %v56_v26 = vsub.f32 %v52_v17, %v54_v18  ;;  %v57_v29 = vsub.f32 %v53_v21, %v55_v22  ;;  %p167_p10 = scmp.ne.s32.totalorder %s100_s1, %s166_s21  ;;  %p172_p12 = scmp.lt.s32.totalorder %s166_s21, %s166_s21 }
  0x21   :  { %v48_v6 = vmul.f32 1.442695, %v46_v4  ;;  %v50_v7 = vmul.f32 1.442695, %v47_v5 }
  0x22   :  { %p173_p13 = por %p172_p12, %p171_p11 }
  0x23   :  { %114 = vpow2.f32 %v48_v6 }
  0x24   :  { %116 = vpow2.f32 %v50_v7  ;;  %p174_p0 = pnand %p173_p13, %p167_p10 }
  0x30   :  { %v115_v8 = vpop.eup %114 }
  0x31   :  { %v117_v9 = vpop.eup %116  ;;  %v58_v10 = vadd.f32 1.0, %v115_v8  ;;  %v61_v12 = vmul.f32 -0.5, %v115_v8  ;;  %v64_v19 = vand.u32 2147483647, %v115_v8 }
  0x32   :  { %v67_v11 = vadd.f32 1.0, %v117_v9  ;;  %v70_v13 = vmul.f32 -0.5, %v117_v9  ;;  %v73_v23 = vand.u32 2147483647, %v117_v9 }
  0x33   :  { %118 = vlog2.f32 %v58_v10  ;;  %v62_v16 = vadd.f32 1.0, %v61_v12  ;;  %vm65_vm0 = vcmp.lt.f32.partialorder %v64_v19, 0.0004427343 }
  0x34   :  { %120 = vlog2.f32 %v67_v11  ;;  %v71_v20 = vadd.f32 1.0, %v70_v13  ;;  %vm74_vm1 = vcmp.lt.f32.partialorder %v73_v23, 0.0004427343 }
  0x35   :  { %v63_v24 = vmul.f32 %v115_v8, %v62_v16 }
  0x36   :  { %v72_v27 = vmul.f32 %v117_v9, %v71_v20 }
  0x40   :  { %v119_v25 = vpop.eup %118 }
  0x41   :  { %v121_v28 = vpop.eup %120  ;;  %v60_v30 = vmul.f32 0.6931472, %v119_v25 }
  0x42   :  { %v69_v31 = vmul.f32 0.6931472, %v121_v28 }
  0x43   :  { %v66_v32 = vsel %vm65_vm0, %v63_v24, %v60_v30 }
  0x44   :  { %v75_v33 = vsel %vm74_vm1, %v72_v27, %v69_v31  ;;  %v76_v34 = vadd.f32 %v66_v32, %v56_v26 }
  0x45   :  { %v77_v35 = vadd.f32 %v75_v33, %v57_v29 }
  0x46   :  { %v78_v36 = vsub.f32 0.0, %v76_v34 }
  0x47   :  { %v79_v37 = vsub.f32 0.0, %v77_v35 }
  0x48   :  { %v80_v38 = vmul.f32 1.442695, %v78_v36 }
  0x49   :  { %v82_v39 = vmul.f32 1.442695, %v79_v37 }
  0x4a   :  { %122 = vpow2.f32 %v80_v38 }
  0x4b   :  { %124 = vpow2.f32 %v82_v39 }
  0x57   :  { %v123_v40 = vpop.eup %122 }
  0x58   :  { %v125_v41 = vpop.eup %124  ;;  %v84_v42 = vsub.f32 1.0, %v123_v40 }
  0x59   :  { %v85_v43 = vsub.f32 1.0, %v125_v41 }
  0x5a   :  { %v86_v44 = vmul.f32 %v84_v42, %v84_v42 }
  0x5b   :  { %v87_v45 = vmul.f32 %v85_v43, %v85_v43 }
  0x5c   :  { %v88_v46 = vmul.f32 %v86_v44, %v76_v34 }
  0x5d   :  { %v89_v47 = vmul.f32 %v87_v45, %v77_v35 }
  0x5f   :  { %v90_v48 = vadd.f32 %v89_v47, %v88_v46 }
  0x61   :  { %92 = vst [vmem:[#allocation7] sm:$0xff] %v90_v48 }
  0x62   :  { %177 = shalt.err (!%p174_p0)
}
  0x63   :  { %102 = dma.vmem_to_hbm [thread:$0]  %s100_s1, 128, %s223_s2, [#allocation4]  }
  0x64   :  { %190 = dma.done.wait [#allocation4], 128  }
  0x65   :  { %191 = vsyncadd [#allocation4], 4294967168 }
  0x66   :  { %106 = vsyncpa [#allocation3], 1 }
  0x67   :  { %107 = vsyncpa [#allocation6], 1 }
  0x68   :  { %108 = vsyncpa [#allocation4], 1 }

</bundles_post_ra>
